<compile_context>
chip_gen: v6e
topology: v6e:2x2x1
jax: 0.10.0
libtpu: 0.0.40
codegen_flags: <defaults>
</compile_context>

<pallas_src>
import functools

import jax
import jax.numpy as jnp
from jax.experimental import pallas as pl
from jax.experimental.pallas import tpu as pltpu


# -----------------------------------------------------------------------------
# Kernels: one grid step = (batch b, row-tile j) of conv3x3 + bias + ReLU,
# partial global-average-pool accumulated in VMEM scratch, fc head on last tile.
# -----------------------------------------------------------------------------
def fused_logits_kernel(p_ref, wc_ref, bc_ref, wfc_ref, bfc_ref,
                        out_ref, acc_ref, *, inv_hw):
    # p_ref:  (1, tile_hw, C*9) bf16   wc_ref: (C*9, F_pad) bf16   bc_ref: (1, F_pad) f32
    # wfc_ref:(F_pad, N_pad) bf16      bfc_ref:(1, N_pad) f32
    # out_ref:(1, 1, N_pad) f32        acc_ref:(1, F_pad) f32 scratch
    j = pl.program_id(1)
    nj = pl.num_programs(1)

    @pl.when(j == 0)
    def _():
        acc_ref[...] = jnp.zeros_like(acc_ref)

    conv = jnp.dot(p_ref[0], wc_ref[...], preferred_element_type=jnp.float32)
    conv = jnp.maximum(conv + bc_ref[...], 0.0)                  # (tile_hw, F_pad)
    # Global-average-pool partial sum: sublane reduction (XLU slot), no pool matmul.
    acc_ref[...] += jnp.sum(conv, axis=0, keepdims=True)         # (1, F_pad)

    @pl.when(j == nj - 1)
    def _():
        pooled = acc_ref[...] * inv_hw                           # flatten(avgpool(x))
        logits = jnp.dot(pooled.astype(jnp.bfloat16), wfc_ref[...],
                         preferred_element_type=jnp.float32) + bfc_ref[...]
        out_ref[0] = logits                                      # lane-dense (1, N_pad)


def fused_feats_kernel(p_ref, wc_ref, bc_ref, out_ref, acc_ref, *, inv_hw):
    # Same trunk, but writes pooled features (extract_features=True); fc is skipped.
    j = pl.program_id(1)
    nj = pl.num_programs(1)

    @pl.when(j == 0)
    def _():
        acc_ref[...] = jnp.zeros_like(acc_ref)

    conv = jnp.dot(p_ref[0], wc_ref[...], preferred_element_type=jnp.float32)
    conv = jnp.maximum(conv + bc_ref[...], 0.0)
    acc_ref[...] += jnp.sum(conv, axis=0, keepdims=True)

    @pl.when(j == nj - 1)
    def _():
        out_ref[0] = acc_ref[...] * inv_hw                       # lane-dense (1, F_pad)


# -----------------------------------------------------------------------------
# im2col (pure layout plumbing, plain JAX / XLA)
# TODO(synk): build patches in-kernel from a halo'd channels-last input tile to cut
#             the ~4.5x HBM inflation of host-side im2col.
# -----------------------------------------------------------------------------
def im2col_3x3_same(x):
    # x: (B, C, H, W) -> (B*H*W, C*9), flatten order (c, ky*3+kx) to match OIHW weights.
    B, C, H, W = x.shape
    xp = jnp.pad(x, ((0, 0), (0, 0), (1, 1), (1, 1)))
    cols = [xp[:, :, ky:ky + H, kx:kx + W] for ky in range(3) for kx in range(3)]
    p = jnp.stack(cols, axis=2)                      # (B, C, 9, H, W)
    p = p.transpose(0, 3, 4, 1, 2)                   # (B, H, W, C, 9)
    return p.reshape(B * H * W, C * 9)


def _row_tile(hw):
    # Largest row tile <= 512 (multiple of 8) that divides HW; full HW if small.
    if hw <= 512:
        return hw
    for t in range(512, 7, -8):
        if hw % t == 0:
            return t
    return hw


# -----------------------------------------------------------------------------
# ModelWrapper forward
# -----------------------------------------------------------------------------
@functools.partial(jax.jit, static_argnames=("extract_features",))
def model_wrapper_forward(x, params, extract_features=False):
    w_conv, b_conv, w_fc, b_fc = (
        params["w_conv"], params["b_conv"], params["w_fc"], params["b_fc"]
    )
    B, C, H, W = x.shape
    HW = H * W
    F = w_conv.shape[0]                     # conv out-channels == model.fc.in_features
    C9 = C * 9
    n_out = w_fc.shape[0]                   # 100
    F_pad = pl.cdiv(F, 128) * 128           # lane-dense conv / feature width
    n_pad = pl.cdiv(n_out, 128) * 128       # lane-dense fc output width
    tile_hw = _row_tile(HW)
    n_tiles = HW // tile_hw

    # ---- operand staging (layout plumbing only; all compute is in-kernel) ----
    patches = im2col_3x3_same(x).reshape(B, HW, C9).astype(jnp.bfloat16)
    w_conv_mm = jnp.zeros((C9, F_pad), jnp.bfloat16).at[:, :F].set(
        w_conv.reshape(F, C9).T.astype(jnp.bfloat16))
    b_conv_row = jnp.zeros((1, F_pad), jnp.float32).at[:, :F].set(b_conv)

    grid = (B, n_tiles)
    p_spec = pl.BlockSpec((1, tile_hw, C9), lambda b, j: (b, j, 0))
    wc_spec = pl.BlockSpec((C9, F_pad), lambda b, j: (0, 0))
    bc_spec = pl.BlockSpec((1, F_pad), lambda b, j: (0, 0))

    # Per-tile VMEM budget (double-buffered patch tile + conv tile + resident weights),
    # clamped to v7x's 64 MiB physical VMEM.
    vmem_est = (2 * tile_hw * C9 * 2            # patch tile, bf16, double buffered
                + tile_hw * F_pad * 4           # conv intermediate, f32
                + 2 * (C9 * F_pad * 2 + F_pad * 4 + F_pad * n_pad * 2 + n_pad * 4)
                + 2 * n_pad * 4 + F_pad * 4)    # output block + scratch
    vmem_limit = int(min(64 * 1024 * 1024, max(16 * 1024 * 1024, 4 * vmem_est)))
    cparams = pltpu.CompilerParams(
        dimension_semantics=("parallel", "arbitrary"),   # batch -> 2 TCs on v7x
        vmem_limit_bytes=vmem_limit)

    conv_flops = 2 * B * HW * C9 * F_pad
    conv_bytes = B * HW * C9 * 2 + C9 * F_pad * 2 + F_pad * 4

    if extract_features:
        feats_pad = pl.pallas_call(
            functools.partial(fused_feats_kernel, inv_hw=1.0 / HW),
            out_shape=jax.ShapeDtypeStruct((B, 1, F_pad), jnp.float32),
            grid_spec=pltpu.PrefetchScalarGridSpec(
                num_scalar_prefetch=0, grid=grid,
                in_specs=[p_spec, wc_spec, bc_spec],
                out_specs=pl.BlockSpec((1, 1, F_pad), lambda b, j: (b, 0, 0)),
                scratch_shapes=[pltpu.VMEM((1, F_pad), jnp.float32)]),
            compiler_params=cparams,
            cost_estimate=pl.CostEstimate(
                flops=conv_flops, transcendentals=0,
                bytes_accessed=conv_bytes + B * F_pad * 4),
        )(patches, w_conv_mm, b_conv_row)
        return feats_pad[:, 0, :F]                                 # torch.flatten(x, 1)

    # Zero-padded, bf16 fc weights (lane-dense 100 -> 128 output; dead F rows are zero).
    w_fc_pad = jnp.zeros((F_pad, n_pad), jnp.bfloat16).at[:F, :n_out].set(
        w_fc.T.astype(jnp.bfloat16))
    b_fc_pad = jnp.zeros((1, n_pad), jnp.float32).at[:, :n_out].set(b_fc)

    logits_pad = pl.pallas_call(
        functools.partial(fused_logits_kernel, inv_hw=1.0 / HW),
        out_shape=jax.ShapeDtypeStruct((B, 1, n_pad), jnp.float32),
        grid_spec=pltpu.PrefetchScalarGridSpec(
            num_scalar_prefetch=0, grid=grid,
            in_specs=[p_spec, wc_spec, bc_spec,
                      pl.BlockSpec((F_pad, n_pad), lambda b, j: (0, 0)),
                      pl.BlockSpec((1, n_pad), lambda b, j: (0, 0))],
            out_specs=pl.BlockSpec((1, 1, n_pad), lambda b, j: (b, 0, 0)),
            scratch_shapes=[pltpu.VMEM((1, F_pad), jnp.float32)]),
        compiler_params=cparams,
        cost_estimate=pl.CostEstimate(
            flops=conv_flops + 2 * B * F_pad * n_pad, transcendentals=0,
            bytes_accessed=conv_bytes + F_pad * n_pad * 2 + n_pad * 4 + B * n_pad * 4),
    )(patches, w_conv_mm, b_conv_row, w_fc_pad, b_fc_pad)
    return logits_pad[:, 0, :n_out]                                # self.fc(x)


# -----------------------------------------------------------------------------
# Pure-JAX f32 reference (for tolerance check) and deterministic params
# -----------------------------------------------------------------------------
def reference_forward(x, params):
    B, C, H, W = x.shape
    F = params["w_conv"].shape[0]
    p = im2col_3x3_same(x)                                          # (B*H*W, C*9) f32
    conv = jnp.maximum(p @ params["w_conv"].reshape(F, C * 9).T + params["b_conv"], 0.0)
    feats = conv.reshape(B, H * W, F).mean(axis=1)                  # avgpool + flatten
    logits = feats @ params["w_fc"].T + params["b_fc"]
    return feats, logits


def init_params(key, C, F, n_out):
    k1, k2, k3, k4 = jax.random.split(key, 4)
    return {
        "w_conv": jax.random.normal(k1, (F, C, 3, 3), jnp.float32) * 0.05,  # OIHW
        "b_conv": jax.random.normal(k2, (F,), jnp.float32) * 0.05,
        "w_fc":   jax.random.normal(k3, (n_out, F), jnp.float32) * 0.05,    # (out, in)
        "b_fc":   jax.random.normal(k4, (n_out,), jnp.float32) * 0.05,
    }


if __name__ == "__main__":
    B, C, H, W = 2, 4, 16, 16
    F = 32          # num_features == model.fc.in_features of the wrapped backbone
    N_OUT = 100

    key = jax.random.PRNGKey(0)
    kx, kp = jax.random.split(key)
    x = jax.random.normal(kx, (B, C, H, W), jnp.float32)
    params = init_params(kp, C, F, N_OUT)

    logits = model_wrapper_forward(x, params, extract_features=False)
    feats = model_wrapper_forward(x, params, extract_features=True)
    jax.block_until_ready((logits, feats))

    assert logits.shape == (B, N_OUT), logits.shape
    assert feats.shape == (B, F), feats.shape

    feats_ref, logits_ref = reference_forward(x, params)
    assert jnp.allclose(feats, feats_ref, atol=5e-2, rtol=5e-2)
    assert jnp.allclose(logits, logits_ref, atol=5e-2, rtol=5e-2)

    print("KERNEL_OK")
</pallas_src>

<mosaic_0001>
module attributes {stable_mosaic.version = 11 : i64} {
  func.func @fused_logits_kernel(%arg0: i32, %arg1: i32, %arg2: memref<1x256x36xbf16, #tpu.memory_space<vmem>>, %arg3: memref<36x128xbf16, #tpu.memory_space<vmem>>, %arg4: memref<1x128xf32, #tpu.memory_space<vmem>>, %arg5: memref<128x128xbf16, #tpu.memory_space<vmem>>, %arg6: memref<1x128xf32, #tpu.memory_space<vmem>>, %arg7: memref<1x1x128xf32, #tpu.memory_space<vmem>>, %arg8: memref<1x128xf32, #tpu.memory_space<vmem>>) attributes {dimension_semantics = [#tpu.dimension_semantics<parallel>, #tpu.dimension_semantics<arbitrary>], iteration_bounds = array<i64: 2, 1>, scalar_prefetch = 0 : i64, scratch_operands = 1 : i64, tpu.core_type = #tpu.core_type<tc>, window_params = [{transform_indices = @transform_0, window_bounds = array<i64: 1, 256, 36>}, {pipeline_mode = #tpu.pipeline_mode<synchronous>, transform_indices = @transform_1, window_bounds = array<i64: 36, 128>}, {pipeline_mode = #tpu.pipeline_mode<synchronous>, transform_indices = @transform_2, window_bounds = array<i64: 1, 128>}, {pipeline_mode = #tpu.pipeline_mode<synchronous>, transform_indices = @transform_3, window_bounds = array<i64: 128, 128>}, {pipeline_mode = #tpu.pipeline_mode<synchronous>, transform_indices = @transform_4, window_bounds = array<i64: 1, 128>}, {transform_indices = @transform_5, window_bounds = array<i64: 1, 1, 128>}]} {
    %c0_i32 = arith.constant 0 : i32
    %0 = arith.cmpi eq, %arg1, %c0_i32 : i32
    %1 = arith.extui %0 : i1 to i32
    %c0_i32_0 = arith.constant 0 : i32
    %2 = arith.cmpi ne, %1, %c0_i32_0 : i32
    scf.if %2 {
      %cst_15 = arith.constant 0.000000e+00 : f32
      %20 = vector.broadcast %cst_15 : f32 to vector<1x128xf32>
      %c0_16 = arith.constant 0 : index
      %c0_17 = arith.constant 0 : index
      %21 = vector.load %arg8[%c0_16, %c0_17] : memref<1x128xf32, #tpu.memory_space<vmem>>, vector<1x128xf32>
      tpu.vector_store %arg8[%c0_16, %c0_17], %20 {strides = array<i32>} : memref<1x128xf32, #tpu.memory_space<vmem>>, vector<1x128xf32>,
    } else {
    }
    %c0 = arith.constant 0 : index
    %c0_1 = arith.constant 0 : index
    %c0_2 = arith.constant 0 : index
    %3 = vector.load %arg2[%c0, %c0_1, %c0_2] : memref<1x256x36xbf16, #tpu.memory_space<vmem>>, vector<1x256x36xbf16>
    %4 = vector.shape_cast %3 : vector<1x256x36xbf16> to vector<256x36xbf16>
    %c0_3 = arith.constant 0 : index
    %c0_4 = arith.constant 0 : index
    %5 = vector.load %arg3[%c0_3, %c0_4] : memref<36x128xbf16, #tpu.memory_space<vmem>>, vector<36x128xbf16>
    %cst = arith.constant dense<0.000000e+00> : vector<256x128xf32>
    %6 = tpu.matmul %4, %5, %cst {dimension_numbers = #tpu.dot_dimension_numbers<[1], [0], [0], [1], [0, 0, 1, 1], [], []>} : vector<256x36xbf16>, vector<36x128xbf16>, vector<256x128xf32> -> vector<256x128xf32>
    %c0_5 = arith.constant 0 : index
    %c0_6 = arith.constant 0 : index
    %7 = vector.load %arg4[%c0_5, %c0_6] : memref<1x128xf32, #tpu.memory_space<vmem>>, vector<1x128xf32>
    %8 = vector.broadcast %7 : vector<1x128xf32> to vector<256x128xf32>
    %9 = arith.addf %6, %8 : vector<256x128xf32>
    %cst_7 = arith.constant 0.000000e+00 : f32
    %10 = vector.broadcast %cst_7 : f32 to vector<256x128xf32>
    %11 = arith.maximumf %9, %10 : vector<256x128xf32>
    %c0_8 = arith.constant 0 : index
    %c0_9 = arith.constant 0 : index
    %12 = vector.load %arg8[%c0_8, %c0_9] : memref<1x128xf32, #tpu.memory_space<vmem>>, vector<1x128xf32>
    %cst_10 = arith.constant dense<0.000000e+00> : vector<128xf32>
    %13 = vector.multi_reduction <add>, %11, %cst_10 [0] : vector<256x128xf32> to vector<128xf32>
    %14 = vector.shape_cast %13 : vector<128xf32> to vector<1x128xf32>
    %15 = arith.addf %12, %14 : vector<1x128xf32>
    %c0_11 = arith.constant 0 : index
    %c0_12 = arith.constant 0 : index
    %16 = vector.load %arg8[%c0_11, %c0_12] : memref<1x128xf32, #tpu.memory_space<vmem>>, vector<1x128xf32>
    tpu.vector_store %arg8[%c0_11, %c0_12], %15 {strides = array<i32>} : memref<1x128xf32, #tpu.memory_space<vmem>>, vector<1x128xf32>,
    %c0_i32_13 = arith.constant 0 : i32
    %17 = arith.cmpi eq, %arg1, %c0_i32_13 : i32
    %18 = arith.extui %17 : i1 to i32
    %c0_i32_14 = arith.constant 0 : i32
    %19 = arith.cmpi ne, %18, %c0_i32_14 : i32
    scf.if %19 {
      %c0_15 = arith.constant 0 : index
      %c0_16 = arith.constant 0 : index
      %20 = vector.load %arg8[%c0_15, %c0_16] : memref<1x128xf32, #tpu.memory_space<vmem>>, vector<1x128xf32>
      %cst_17 = arith.constant 3.906250e-03 : f32
      %21 = vector.broadcast %cst_17 : f32 to vector<1x128xf32>
      %22 = arith.mulf %20, %21 : vector<1x128xf32>
      %23 = arith.truncf %22 : vector<1x128xf32> to vector<1x128xbf16>
      %c0_18 = arith.constant 0 : index
      %c0_19 = arith.constant 0 : index
      %24 = vector.load %arg5[%c0_18, %c0_19] : memref<128x128xbf16, #tpu.memory_space<vmem>>, vector<128x128xbf16>
      %cst_20 = arith.constant dense<0.000000e+00> : vector<1x128xf32>
      %25 = tpu.matmul %23, %24, %cst_20 {dimension_numbers = #tpu.dot_dimension_numbers<[1], [0], [0], [1], [0, 0, 1, 1], [], []>} : vector<1x128xbf16>, vector<128x128xbf16>, vector<1x128xf32> -> vector<1x128xf32>
      %c0_21 = arith.constant 0 : index
      %c0_22 = arith.constant 0 : index
      %26 = vector.load %arg6[%c0_21, %c0_22] : memref<1x128xf32, #tpu.memory_space<vmem>>, vector<1x128xf32>
      %27 = arith.addf %25, %26 : vector<1x128xf32>
      %c0_23 = arith.constant 0 : index
      %c0_24 = arith.constant 0 : index
      %c0_25 = arith.constant 0 : index
      %28 = vector.load %arg7[%c0_23, %c0_24, %c0_25] : memref<1x1x128xf32, #tpu.memory_space<vmem>>, vector<1x1x128xf32>
      %29 = vector.shape_cast %28 : vector<1x1x128xf32> to vector<1x128xf32>
      %30 = vector.shape_cast %27 : vector<1x128xf32> to vector<1x1x128xf32>
      tpu.vector_store %arg7[%c0_23, %c0_24, %c0_25], %30 {strides = array<i32>} : memref<1x1x128xf32, #tpu.memory_space<vmem>>, vector<1x1x128xf32>,
    } else {
    }
    return
  }
  func.func @transform_0(%arg0: i32, %arg1: i32) -> (i32, i32, i32) {
    %c0_i32 = arith.constant 0 : i32
    %c0_i32_0 = arith.constant 0 : i32
    return %arg0, %arg1, %c0_i32 : i32, i32, i32
  }
  func.func @transform_1(%arg0: i32, %arg1: i32) -> (i32, i32) {
    %c0_i32 = arith.constant 0 : i32
    %c0_i32_0 = arith.constant 0 : i32
    %c0_i32_1 = arith.constant 0 : i32
    return %c0_i32, %c0_i32_0 : i32, i32
  }
  func.func @transform_2(%arg0: i32, %arg1: i32) -> (i32, i32) {
    %c0_i32 = arith.constant 0 : i32
    %c0_i32_0 = arith.constant 0 : i32
    %c0_i32_1 = arith.constant 0 : i32
    return %c0_i32, %c0_i32_0 : i32, i32
  }
  func.func @transform_3(%arg0: i32, %arg1: i32) -> (i32, i32) {
    %c0_i32 = arith.constant 0 : i32
    %c0_i32_0 = arith.constant 0 : i32
    %c0_i32_1 = arith.constant 0 : i32
    return %c0_i32, %c0_i32_0 : i32, i32
  }
  func.func @transform_4(%arg0: i32, %arg1: i32) -> (i32, i32) {
    %c0_i32 = arith.constant 0 : i32
    %c0_i32_0 = arith.constant 0 : i32
    %c0_i32_1 = arith.constant 0 : i32
    return %c0_i32, %c0_i32_0 : i32, i32
  }
  func.func @transform_5(%arg0: i32, %arg1: i32) -> (i32, i32, i32) {
    %c0_i32 = arith.constant 0 : i32
    %c0_i32_0 = arith.constant 0 : i32
    %c0_i32_1 = arith.constant 0 : i32
    return %arg0, %c0_i32, %c0_i32_0 : i32, i32, i32
  }
}

</mosaic_0001>

<bundles_post_ra>
// kernel: model_wrapper_forward.1
= control target key start
LH: loop header
LB: loop body
LE: loop exit
PB: predicated region body
PF: predicated region fallthrough
CT: control target
= control target key end

     0   :  { %10 = vsyncpa [#allocation4], 0  ;;  %s1430_s0 = inlined_call_operand.vmem [shape: bf16[2,256,36], index: 0, kind: input, shape index: {}]   ;;  %s1431_s1 = inlined_call_operand.vmem [shape: bf16[36,128], index: 1, kind: input, shape index: {}]   ;;  %s1432_s2 = inlined_call_operand.vmem [shape: f32[1,128], index: 2, kind: input, shape index: {}]   ;;  %s1433_s3 = inlined_call_operand.vmem [shape: bf16[128,128], index: 3, kind: input, shape index: {}]   ;;  %s1434_s4 = inlined_call_operand.vmem [shape: f32[1,128], index: 4, kind: input, shape index: {}]   ;;  %s1435_s5 = inlined_call_operand.hbm [shape: f32[2,1,128], index: 5, kind: output, shape index: {}]  }
   0x1   :  { %12 = vsyncpa [#allocation4 + $0x1], 0  ;;  %s1212_s18 = smov 0   ;;  %s1214_s19 = smov 0  }
   0x2   :  { %s1216_s20 = smov 0   ;;  %s1218_s21 = smov 0  }
   0x3   :  { %s1220_s22 = smov 0   ;;  %s1222_s23 = smov 0  }
   0x4 LB: > { %s875_s24 = sadd.s32 4294967295, %s1177_s23   ;;  %s876_s25 = sadd.s32 4294967294, %s1177_s23   ;;  %s1177_s23 = sphi %s1222_s23, %s18_s23   ;;  %s1173_s22 = sphi %s1220_s22, %s1442_s22   ;;  %s1169_s21 = sphi %s1218_s21, %s1441_s21   ;;  %s1165_s20 = sphi %s1216_s20, %s1440_s20   ;;  %s1161_s19 = sphi %s1214_s19, %s1439_s19   ;;  %s1157_s18 = sphi %s1212_s18, %s1438_s18  }
   0x5   : > { %s30_s26 = sadd.s32 1, %s1173_s22  ;;  %s149_s27 = sadd.s32 1, %s1165_s20 }
   0x6   : > { %p32_p0 = scmp.ge.s32.totalorder %s30_s26, 2  ;;  %p159_p1 = scmp.ne.s32.totalorder %s1165_s20, %s1161_s19 }
   0x7   : > { %p160_p2 = scmp.eq.s32.totalorder %s875_s24, 1  ;;  %p165_p3 = scmp.ne.s32.totalorder %s1161_s19, %s1157_s18 }
   0x8   : > { %s1444_s26 = smov (%p32_p0, %s30_s26), 0  ;;  %p166_p5 = scmp.eq.s32.totalorder %s876_s25, 1 }
   0x9   : > { %p1252_p4 = por %p160_p2, %p159_p1  ;;  %s146_s29 = ssub.s32 %s1173_s22, %s1444_s26 }
   0xa   : > { %p879_p6 = scmp.ge.s32.totalorder %s1177_s23, 1  ;;  %p147_p7 = scmp.eq.s32.totalorder %s146_s29, 0 }
   0xb   : > { %p1259_p8 = por %p166_p5, %p165_p3  ;;  %p209_p9 = scmp.lt.s32.totalorder %s1177_s23, 3 }
   0xc   : > { %s1265_s6 = scalar_select %p147_p7, %s1165_s20, %s149_s27  }
   0xd   : > { %p210_p10 = pnand %p879_p6, %p209_p9 }
   0xe   : > { %p241_p11 = scmp.lt.s32.totalorder (!%p210_p10), %s1169_s21, 1  ;;  %s238_s29 = sand.u32 (!%p210_p10), 1, %s1161_s19  }
   0xf   : > { %213 = sbr.rel (%p210_p10) target bundleno = 533 (0x215), region = 40  ;;  %s926_s9 = sshll.u32 (!%p210_p10), %s1169_s21, 4 }
  0x10   : > { %s239_s10 = scalar_lea.vmem (!%p210_p10), [#allocation3], %s238_s29  ;;  %s794_s15 = scalar_lea.sflag (!%p210_p10), [#allocation4], %s238_s29 }
  0x11   : > { %s806_s11 = sshll.u32 (!%p210_p10), %s239_s10, 4  ;;  %s1386_s11 = int_to_ptr.vmem [resolvable:$true] %s806_s11 }
  0x12   : > { %s1101_s16 = scalar_lea.vmem (!%p210_p10), %s1386_s11, 16 }
  0x13   : > { %p1102_p12 = scmp.ne.s32.totalorder (!%p210_p10), %s1386_s11, %s1101_s16 }
  0x14   : > { %v1074_v0 = vld [vmem:[%s1431_s1 + $0x10] ss:$0 sps:$4 sm:$0x33]   ;;  %vm444_vm0 = vcmask 1041408   ;;  %v1075_v1 = vld [vmem:[%s1431_s1 + $0x8] sm:$0xff]   ;;  %v1076_v3 = vld [vmem:[%s1431_s1] sm:$0xff]  }
  0x15   : > { %1016 = vmatprep.subr.msk.bf16.mxu0 %vm444_vm0, %v1074_v0  ;;  %v446_v2 = vsel %vm444_vm0, %v1074_v0, 0  ;;  %s242_s13 = scalar_select %p241_p11, %s1169_s21, 1  ;;  %vm395_vm1 = vcmask 293888   ;;  %v1179_v20 = vmov 0.0   ;;  %v1093_v21 = vld [vmem:[%s1433_s3 + $0x38] sm:$0xff]   ;;  %v1094_v22 = vld [vmem:[%s1433_s3 + $0x30] sm:$0xff]  }
  0x16   : > { %959 = vmatpush3.bf16.msra.mxu0 %v446_v2  ;;  %255 = vst [vmem:[#allocation2] sm:$0x1] %v1179_v20  ;;  %996 = vmatprep.subr.bf16.mxu1 %v1179_v20  ;;  %v1095_v23 = vld [vmem:[%s1433_s3 + $0x28] sm:$0xff]   ;;  %v1096_v24 = vld [vmem:[%s1433_s3 + $0x20] sm:$0xff]   ;;  %v1097_v25 = vld [vmem:[%s1433_s3 + $0x18] sm:$0xff]   ;;  %vm1180_vm2 = vmmov 0   ;;  %p1103_p13 = pnand %p1102_p12, %p1252_p4 }
  0x17   : > { %960 = vmatprep.subr.bf16.mxu0 %v1075_v1  ;;  %s929_s14 = sshll.u32 %s242_s13, 7  ;;  %997 = vmatpush3.bf16.msra.mxu1 %v1093_v21  ;;  %v1098_v26 = vld [vmem:[%s1433_s3 + $0x10] sm:$0xff]   ;;  %v1099_v27 = vld [vmem:[%s1433_s3 + $0x8] sm:$0xff]   ;;  %v1100_v28 = vld [vmem:[%s1433_s3] sm:$0xff]   ;;  %s1181_s21 = smov [#allocation3]  }
  0x18   : > { %s1281_s17 = scalar_lea.vmem %s1430_s0, %s929_s14  ;;  %998 = vmatprep.subr.bf16.mxu1 %v1179_v20  ;;  %1012 = vmatprep.mubr.msk.bf16.mxu1 %vm1180_vm2, %v1179_v20  ;;  %v1342_v31 = vld [vmem:[%s1432_s2] ss:$0 sm:$0xff]  ;;  %s1384_s14 = scalar_lea.hbm %s1435_s5, %s926_s9 }
  0x19   : > { %v1077_v4 = vld [vmem:[%s1281_s17] sm:$0xff]   ;;  %v1078_v5 = vld [vmem:[%s1281_s17 + $0x8] sm:$0xff]   ;;  %v1079_v6 = vld [vmem:[%s1281_s17 + $0x10] sm:$0xff]   ;;  %p1104_p0 = pneg %p1103_p13 }
  0x1a   : > { %961 = vmatpush3.bf16.msra.mxu0 %v1075_v1  ;;  %964 = vmatprep.mubr.msk.bf16.mxu0 %vm395_vm1, %v1077_v4  ;;  %v1080_v7 = vld [vmem:[%s1281_s17 + $0x18] sm:$0xff]   ;;  %v1081_v8 = vld [vmem:[%s1281_s17 + $0x20] sm:$0xff]   ;;  %v1082_v9 = vld [vmem:[%s1281_s17 + $0x28] sm:$0xff]  }
  0x1b   : > { %962 = vmatprep.subr.bf16.mxu0 %v1076_v3  ;;  %v1083_v10 = vld [vmem:[%s1281_s17 + $0x30] sm:$0xff]   ;;  %v1084_v11 = vld [vmem:[%s1281_s17 + $0x38] sm:$0xff]   ;;  %v1085_v12 = vld [vmem:[%s1281_s17 + $0x40] sm:$0xff]   ;;  %999 = vmatpush3.bf16.msra.mxu1 %v1094_v22 }
  0x1c   : > { %v1086_v13 = vld [vmem:[%s1281_s17 + $0x48] sm:$0xff]   ;;  %v1087_v14 = vld [vmem:[%s1281_s17 + $0x50] sm:$0xff]   ;;  %v1088_v15 = vld [vmem:[%s1281_s17 + $0x58] sm:$0xff]   ;;  %1000 = vmatprep.subr.bf16.mxu1 %v1179_v20 }
  0x1d   : > { %v1089_v16 = vld [vmem:[%s1281_s17 + $0x60] sm:$0xff]   ;;  %v1090_v17 = vld [vmem:[%s1281_s17 + $0x68] sm:$0xff]   ;;  %v1091_v18 = vld [vmem:[%s1281_s17 + $0x70] sm:$0xff]  }
  0x1e   : > { %963 = vmatpush3.bf16.msra.mxu0 %v1076_v3  ;;  %v1092_v19 = vld [vmem:[%s1281_s17 + $0x78] sm:$0xff]   ;;  %s1105_s17 = sshll.u32 %s1181_s21, 4  ;;  %s1106_s17 = int_to_ptr.vmem [resolvable:$false] %s1105_s17 }
  0x1f   : > { %1001 = vmatpush3.bf16.msra.mxu1 %v1095_v23  ;;  %s1107_s24 = scalar_lea.vmem %s1106_s17, 32  ;;  %p1108_p1 = scmp.lt.s32.totalorder %s1386_s11, %s1106_s17 }
  0x20   : > { %1002 = vmatprep.subr.bf16.mxu1 %v1179_v20  ;;  %p1109_p2 = scmp.lt.s32.totalorder %s1107_s24, %s1101_s16 }
  0x21   : > { %965 = vmatmul.mubr.msk.bf16.vlgmr.msra.gmra.mxu0 %vm395_vm1, %v1078_v5 }
  0x22   : > { %968 = vmatprep.mubr.msk.bf16.mxu0 %vm395_vm1, %v1079_v6  ;;  %p1110_p3 = por %p1109_p2, %p1108_p1 }
  0x23   : > { %1003 = vmatpush3.bf16.msra.mxu1 %v1096_v24 }
  0x24   : > { %1004 = vmatprep.subr.bf16.mxu1 %v1179_v20  ;;  %p1111_p5 = pnand %p1110_p3, %p1104_p0 }
  0x27   : > { %1005 = vmatpush3.bf16.msra.mxu1 %v1097_v25 }
  0x28   : > { %1006 = vmatprep.subr.bf16.mxu1 %v1179_v20 }
  0x29   : > { %969 = vmatmul.mubr.msk.bf16.gmra.mxu0 %vm395_vm1, %v1080_v7 }
  0x2a   : > { %972 = vmatprep.mubr.msk.bf16.mxu0 %vm395_vm1, %v1081_v8 }
  0x2b   : > { %1007 = vmatpush3.bf16.msra.mxu1 %v1098_v26 }
  0x2c   : > { %1008 = vmatprep.subr.bf16.mxu1 %v1179_v20 }
  0x2f   : > { %1009 = vmatpush3.bf16.msra.mxu1 %v1099_v27 }
  0x30   : > { %1010 = vmatprep.subr.bf16.mxu1 %v1179_v20 }
  0x31   : > { %973 = vmatmul.mubr.msk.bf16.gmra.mxu0 %vm395_vm1, %v1082_v9 }
  0x32   : > { %976 = vmatprep.mubr.msk.bf16.mxu0 %vm395_vm1, %v1083_v10 }
  0x33   : > { %1011 = vmatpush3.bf16.msra.mxu1 %v1100_v28 }
  0x39   : > { %977 = vmatmul.mubr.msk.bf16.gmra.mxu0 %vm395_vm1, %v1084_v11 }
  0x3a   : > { %980 = vmatprep.mubr.msk.bf16.mxu0 %vm395_vm1, %v1085_v12 }
  0x41   : > { %981 = vmatmul.mubr.msk.bf16.gmra.mxu0 %vm395_vm1, %v1086_v13 }
  0x42   : > { %984 = vmatprep.mubr.msk.bf16.mxu0 %vm395_vm1, %v1087_v14 }
  0x49   : > { %985 = vmatmul.mubr.msk.bf16.gmra.mxu0 %vm395_vm1, %v1088_v15 }
  0x4a   : > { %988 = vmatprep.mubr.msk.bf16.mxu0 %vm395_vm1, %v1089_v16 }
  0x51   : > { %989 = vmatmul.mubr.msk.bf16.gmra.mxu0 %vm395_vm1, %v1090_v17 }
  0x52   : > { %992 = vmatprep.mubr.msk.bf16.mxu0 %vm395_vm1, %v1091_v18 }
  0x59   : > { %993 = vmatmul.mubr.msk.bf16.gmra.mxu0 %vm395_vm1, %v1092_v19 }
  0xe1   : > { %v966_v29 = vpop.f32.mrf.mxu0 }
  0xe2   : > { %v491_v35 = vadd.f32 %v966_v29, %v1342_v31 }
  0xe3   : > { %v482_v30 = vpop.f32.mrf.mxu0 }
  0xe4   : > { %v483_v33 = vadd.f32 %v1342_v31, %v482_v30  ;;  %v611_v42 = vmax.f32 %v491_v35, 0.0 }
  0xe5   : > { %v967_v32 = vpop.f32.mrf.mxu0 }
  0xe6   : > { %v609_v38 = vmax.f32 %v483_v33, 0.0  ;;  %v494_v39 = vadd.f32 %v967_v32, %v1342_v31 }
  0xe7   : > { %v485_v34 = vpop.f32.mrf.mxu0 }
  0xe8   : > { %v486_v36 = vadd.f32 %v1342_v31, %v485_v34  ;;  %v612_v46 = vmax.f32 %v494_v39, 0.0 }
  0xe9   : > { %v970_v37 = vpop.f32.mrf.mxu0 }
  0xea   : > { %v610_v40 = vmax.f32 %v486_v36, 0.0  ;;  %v507_v49 = vadd.f32 %v970_v37, %v1342_v31 }
  0xeb   : > { %v498_v41 = vpop.f32.mrf.mxu0 }
  0xec   : > { %v642_v43 = vadd.f32 %v610_v40, %v609_v38  ;;  %v499_v44 = vadd.f32 %v1342_v31, %v498_v41  ;;  %v615_v58 = vmax.f32 %v507_v49, 0.0 }
  0xed   : > { %v971_v45 = vpop.f32.mrf.mxu0 }
  0xee   : > { %v643_v47 = vadd.f32 %v642_v43, %v611_v42  ;;  %v613_v50 = vmax.f32 %v499_v44, 0.0  ;;  %v510_v55 = vadd.f32 %v971_v45, %v1342_v31 }
  0xef   : > { %v501_v48 = vpop.f32.mrf.mxu0 }
  0xf0   : > { %v644_v51 = vadd.f32 %v643_v47, %v612_v46  ;;  %v502_v52 = vadd.f32 %v1342_v31, %v501_v48  ;;  %v616_v62 = vmax.f32 %v510_v55, 0.0 }
  0xf1   : > { %v974_v53 = vpop.f32.mrf.mxu0 }
  0xf2   : > { %v645_v54 = vadd.f32 %v644_v51, %v613_v50  ;;  %v614_v56 = vmax.f32 %v502_v52, 0.0  ;;  %v523_v1 = vadd.f32 %v974_v53, %v1342_v31 }
  0xf3   : > { %v514_v57 = vpop.f32.mrf.mxu0 }
  0xf4   : > { %v646_v59 = vadd.f32 %v645_v54, %v614_v56  ;;  %v515_v60 = vadd.f32 %v1342_v31, %v514_v57  ;;  %v619_v10 = vmax.f32 %v523_v1, 0.0 }
  0xf5   : > { %v975_v61 = vpop.f32.mrf.mxu0 }
  0xf6   : > { %v647_v63 = vadd.f32 %v646_v59, %v615_v58  ;;  %v617_v2 = vmax.f32 %v515_v60, 0.0  ;;  %v526_v7 = vadd.f32 %v975_v61, %v1342_v31 }
  0xf7   : > { %v517_v0 = vpop.f32.mrf.mxu0 }
  0xf8   : > { %v648_v3 = vadd.f32 %v647_v63, %v616_v62  ;;  %v518_v4 = vadd.f32 %v1342_v31, %v517_v0  ;;  %v620_v14 = vmax.f32 %v526_v7, 0.0 }
  0xf9   : > { %v978_v5 = vpop.f32.mrf.mxu0 }
  0xfa   : > { %v649_v6 = vadd.f32 %v648_v3, %v617_v2  ;;  %v618_v8 = vmax.f32 %v518_v4, 0.0  ;;  %v539_v17 = vadd.f32 %v978_v5, %v1342_v31 }
  0xfb   : > { %v530_v9 = vpop.f32.mrf.mxu0 }
  0xfc   : > { %v650_v11 = vadd.f32 %v649_v6, %v618_v8  ;;  %v531_v12 = vadd.f32 %v1342_v31, %v530_v9  ;;  %v623_v26 = vmax.f32 %v539_v17, 0.0 }
  0xfd   : > { %v979_v13 = vpop.f32.mrf.mxu0 }
  0xfe   : > { %v651_v15 = vadd.f32 %v650_v11, %v619_v10  ;;  %v621_v18 = vmax.f32 %v531_v12, 0.0  ;;  %v542_v23 = vadd.f32 %v979_v13, %v1342_v31 }
  0xff   : > { %v533_v16 = vpop.f32.mrf.mxu0 }
 0x100   : > { %v652_v19 = vadd.f32 %v651_v15, %v620_v14  ;;  %v534_v20 = vadd.f32 %v1342_v31, %v533_v16  ;;  %v624_v30 = vmax.f32 %v542_v23, 0.0 }
 0x101   : > { %v982_v21 = vpop.f32.mrf.mxu0 }
 0x102   : > { %v653_v22 = vadd.f32 %v652_v19, %v621_v18  ;;  %v622_v24 = vmax.f32 %v534_v20, 0.0  ;;  %v555_v34 = vadd.f32 %v982_v21, %v1342_v31 }
 0x103   : > { %v546_v25 = vpop.f32.mrf.mxu0 }
 0x104   : > { %v654_v27 = vadd.f32 %v653_v22, %v622_v24  ;;  %v547_v28 = vadd.f32 %v1342_v31, %v546_v25  ;;  %v627_v43 = vmax.f32 %v555_v34, 0.0 }
 0x105   : > { %v983_v29 = vpop.f32.mrf.mxu0 }
 0x106   : > { %v655_v32 = vadd.f32 %v654_v27, %v623_v26  ;;  %v625_v35 = vmax.f32 %v547_v28, 0.0  ;;  %v558_v40 = vadd.f32 %v983_v29, %v1342_v31 }
 0x107   : > { %v549_v33 = vpop.f32.mrf.mxu0 }
 0x108   : > { %v656_v36 = vadd.f32 %v655_v32, %v624_v30  ;;  %v550_v37 = vadd.f32 %v1342_v31, %v549_v33  ;;  %v628_v47 = vmax.f32 %v558_v40, 0.0 }
 0x109   : > { %v986_v38 = vpop.f32.mrf.mxu0 }
 0x10a   : > { %v657_v39 = vadd.f32 %v656_v36, %v625_v35  ;;  %v626_v41 = vmax.f32 %v550_v37, 0.0  ;;  %v571_v50 = vadd.f32 %v986_v38, %v1342_v31  ;;  %v641_v36 = vld [vmem:[#allocation2] sm:$0x1] }
 0x10b   : > { %v562_v42 = vpop.f32.mrf.mxu0 }
 0x10c   : > { %v658_v44 = vadd.f32 %v657_v39, %v626_v41  ;;  %v563_v45 = vadd.f32 %v1342_v31, %v562_v42  ;;  %v631_v59 = vmax.f32 %v571_v50, 0.0  ;;  %v703_v41 = vld [vmem:[%s1434_s4] sm:$0x1] }
 0x10d   : > { %v987_v46 = vpop.f32.mrf.mxu0 }
 0x10e   : > { %v659_v48 = vadd.f32 %v658_v44, %v627_v43  ;;  %v629_v51 = vmax.f32 %v563_v45, 0.0  ;;  %v574_v56 = vadd.f32 %v987_v46, %v1342_v31 }
 0x10f   : > { %v565_v49 = vpop.f32.mrf.mxu0 }
 0x110   : > { %v660_v52 = vadd.f32 %v659_v48, %v628_v47  ;;  %v566_v53 = vadd.f32 %v1342_v31, %v565_v49  ;;  %v632_v63 = vmax.f32 %v574_v56, 0.0 }
 0x111   : > { %v990_v54 = vpop.f32.mrf.mxu0 }
 0x112   : > { %v661_v55 = vadd.f32 %v660_v52, %v629_v51  ;;  %v630_v57 = vmax.f32 %v566_v53, 0.0  ;;  %v587_v2 = vadd.f32 %v990_v54, %v1342_v31 }
 0x113   : > { %v578_v58 = vpop.f32.mrf.mxu0 }
 0x114   : > { %v662_v60 = vadd.f32 %v661_v55, %v630_v57  ;;  %v579_v61 = vadd.f32 %v1342_v31, %v578_v58  ;;  %v635_v11 = vmax.f32 %v587_v2, 0.0 }
 0x115   : > { %v991_v62 = vpop.f32.mrf.mxu0 }
 0x116   : > { %v663_v0 = vadd.f32 %v662_v60, %v631_v59  ;;  %v633_v3 = vmax.f32 %v579_v61, 0.0  ;;  %v590_v8 = vadd.f32 %v991_v62, %v1342_v31 }
 0x117   : > { %v581_v1 = vpop.f32.mrf.mxu0 }
 0x118   : > { %v664_v4 = vadd.f32 %v663_v0, %v632_v63  ;;  %v582_v5 = vadd.f32 %v1342_v31, %v581_v1  ;;  %v636_v15 = vmax.f32 %v590_v8, 0.0 }
 0x119   : > { %v994_v6 = vpop.f32.mrf.mxu0 }
 0x11a   : > { %v665_v7 = vadd.f32 %v664_v4, %v633_v3  ;;  %v634_v9 = vmax.f32 %v582_v5, 0.0  ;;  %v603_v18 = vadd.f32 %v994_v6, %v1342_v31 }
 0x11b   : > { %v594_v10 = vpop.f32.mrf.mxu0 }
 0x11c   : > { %v666_v12 = vadd.f32 %v665_v7, %v634_v9  ;;  %v595_v13 = vadd.f32 %v1342_v31, %v594_v10  ;;  %v639_v25 = vmax.f32 %v603_v18, 0.0 }
 0x11d   : > { %v995_v14 = vpop.f32.mrf.mxu0 }
 0x11e   : > { %v667_v16 = vadd.f32 %v666_v12, %v635_v11  ;;  %v637_v19 = vmax.f32 %v595_v13, 0.0  ;;  %v606_v23 = vadd.f32 %v995_v14, %v1342_v31 }
 0x11f   : > { %v597_v17 = vpop.f32.mrf.mxu0 }
 0x120   : > { %v668_v20 = vadd.f32 %v667_v16, %v636_v15  ;;  %v598_v21 = vadd.f32 %v1342_v31, %v597_v17  ;;  %v640_v27 = vmax.f32 %v606_v23, 0.0 }
 0x122   : > { %v669_v22 = vadd.f32 %v668_v20, %v637_v19  ;;  %v638_v24 = vmax.f32 %v598_v21, 0.0 }
 0x124   : > { %v670_v26 = vadd.f32 %v669_v22, %v638_v24 }
 0x126   : > { %v671_v28 = vadd.f32 %v670_v26, %v639_v25 }
 0x128   : > { %v672_v29 = vadd.f32 %v671_v28, %v640_v27 }
 0x12a   : > { %v673_v30 = vrot.slane %v672_v29, 4 }
 0x12c   : > { %v674_v32 = vadd.f32 %v673_v30, %v672_v29 }
 0x12e   : > { %v675_v33 = vrot.slane %v674_v32, 2 }
 0x130   : > { %v676_v34 = vadd.f32 %v675_v33, %v674_v32 }
 0x132   : > { %v677_v35 = vrot.slane %v676_v34, 1 }
 0x134   : > { %v678_v37 = vadd.f32 %v677_v35, %v676_v34 }
 0x136   : > { %v679_v38 = vadd.f32 %v678_v37, %v641_v36 }
 0x138   : > { %680 = vst [vmem:[#allocation2] sm:$0x1] %v679_v38 }
 0x13f   : > { %v684_v39 = vld [vmem:[#allocation2] sm:$0x1] }
 0x140   : > { %v685_v40 = vmul.f32 0.00390625, %v684_v39 }
 0x142   : > { %v686_v31 = vpack.c.bf16 %v685_v40, %v685_v40 }
 0x144   : > { %1013 = vmatmul.mubr.bf16.vlgmr.msra.gmra.mxu1 %v686_v31 }
 0x204   : > { %v786_v42 = vpop.f32.mrf.mxu1 }
 0x205   : > { %v787_v43 = vadd.f32 %v786_v42, %v703_v41 }
 0x206   : > { %v1014_v44 = vpop.f32.mrf.mxu1 }
 0x207   : > { %792 = vst [vmem:[%s239_s10] sm:$0x1] %v787_v43 }
 0x208   : > { %v789_v45 = vpop.f32.mrf.mxu1 }
 0x209   : > { %1114 = shalt.err (!%p1111_p5)
}
 0x20a   : > { %s1115_s25 = scalar_lea.hbm %s1384_s14, 16  ;;  %s1119_s7 = scalar_lea.hbm %s1435_s5, 32 }
 0x20b   : > { %p1116_p6 = scmp.ne.s32.totalorder %s1384_s14, %s1115_s25  ;;  %p1120_p10 = scmp.lt.s32.totalorder %s1384_s14, %s1435_s5 }
 0x20c   : > { %p1121_p11 = scmp.lt.s32.totalorder %s1119_s7, %s1115_s25 }
 0x20d   : > { %p1117_p7 = pnand %p1116_p6, %p1252_p4 }
 0x20e   : > { %p1122_p12 = por %p1121_p11, %p1120_p10 }
 0x20f   : > { %p1118_p9 = pneg %p1117_p7 }
 0x211   : > { %p1123_p13 = pnand %p1122_p12, %p1118_p9 }
 0x213   : > { %1126 = shalt.err (!%p1123_p13)
}
 0x214   : > { %1017 = dma.vmem_to_hbm [thread:$0]  (%p1252_p4), %s1386_s11, 16, %s1384_s14, %s794_s15   ;;  %v1015_v46 = vpop.f32.mrf.mxu1 }
 0x215 PF: > { %p1023_p0 = scmp.ge.s32.totalorder %s1177_s23, 2  ;;  %s818_s10 = sand.u32 1, %s1157_s18  }
 0x216   : > { %s819_s12 = scalar_lea.sflag [#allocation4], %s818_s10 }
 0x217   : > { %p1020_p1 = pnand %p1023_p0, %p1259_p8 }
 0x219   : > { %p1021_p2 = pneg %p1020_p1 }
 0x21b   : > { %1152 = dma.done.wait (%p1021_p2), %s819_s12, 16  }
 0x21c   : > { %1154 = vsyncadd (%p1021_p2), %s819_s12, 4294967280  ;;  %s18_s23 = sadd.s32 1, %s1177_s23   ;;  %s1438_s18 = smov %s1161_s19 }
 0x21d   : > { %p15_p3 = scmp.ge.s32.totalorder %s18_s23, 4   ;;  %s1439_s19 = smov %s1165_s20 }
 0x21e   : > { %s1440_s20 = smov %s1265_s6  ;;  %s1441_s21 = smov %s1173_s22 }
 0x21f   : > { %s1442_s22 = smov %s1444_s26  ;;  %17 = sbr.rel (!%p15_p3) target bundleno = 4 (0x4), region = 83 }
 0x224   :  { %823 = vsyncpa [#allocation4], 1 }
 0x225   :  { %825 = vsyncpa [#allocation4 + $0x1], 1 }

</bundles_post_ra>
